<compile_context>
chip_gen: v6e
topology: v6e:2x2x1
jax: 0.10.0
libtpu: 0.0.40
codegen_flags: <defaults>
</compile_context>

<pallas_src>
import functools

import jax
import jax.numpy as jnp
from jax.experimental import pallas as pl
from jax.experimental.pallas import tpu as pltpu

_MIB = 1024 * 1024
_VMEM_LIMIT_BYTES = 48 * _MIB    # <= v7x physical (64 MiB/TC), << v5e/v6e (128 MiB)
_VMEM_HEADROOM_BYTES = 6 * _MIB  # slack for Mosaic internal scratch / spills
_LIVE_F32_TEMPS = 5              # conservative count of concurrently-live block-sized f32 temps


def _mish_kernel(x_ref, o_ref, *, newton_steps):
    # TODO(synk): on v6e/v7x, evaluate the rational natively in bf16 for bf16
    # I/O (bf16 VPU/EUP); kept in f32 here for v5e compatibility and lowering
    # robustness.
    x = x_ref[...].astype(jnp.float32)
    # tanh(softplus(x)) = tanh(log(1 + e^x)) = (e^2 + 2e) / (e^2 + 2e + 2),
    # e = exp(x).  Clamp at 20 (torch softplus threshold); for x > 20 the
    # factor is 1.0 in f32, so mish(x) == x exactly.
    big = x > 20.0                        # computed once, reused for clamp + select
    e = jnp.exp(jnp.where(big, 20.0, x))  # == exp(min(x, 20)) without a 2nd compare
    num = e * (e + 2.0)
    den = num + 2.0                       # >= 2, never zero
    r = pl.reciprocal(den, approx=True)   # EUP push (separate bundle slot -> ~free)
    for _ in range(newton_steps):         # 1 step for f32 out, 0 for bf16/f16 out
        r = r * (2.0 - den * r)
    y = jnp.where(big, x, x * (num * r))
    o_ref[...] = y.astype(o_ref.dtype)


def _generation_defaults():
    """Returns (target f32-compute block bytes, use_core_parallel)."""
    try:
        kind = jax.devices()[0].device_kind.lower()
    except Exception:
        kind = ""
    if "v7" in kind or "tpu7" in kind:
        # v7x: ~3.2 TB/s per TC -> big blocks; 2 TCs -> core-parallel grid axis.
        return 6 * _MIB, True
    if "v6" in kind:
        return 6 * _MIB, False
    if "v5" in kind:
        return 4 * _MIB, False
    return 4 * _MIB, False


def _mish_jnp(x):
    """Pure-jnp Mish (used for the <128-element ragged tail and as reference)."""
    xf = x.astype(jnp.float32)
    sp = jnp.where(xf > 20.0, xf, jnp.log1p(jnp.exp(jnp.minimum(xf, 20.0))))
    return (xf * jnp.tanh(sp)).astype(x.dtype)


def mish(x, *, target_block_bytes=None):
    """Elementwise Mish via Pallas. Accepts any shape / float dtype.

    `target_block_bytes` is the per-block f32 *compute* footprint.  Default is
    generation-aware (~6 MiB on v6e/v7x, ~4 MiB on v5e / unknown chips).
    """
    orig_shape = x.shape
    dtype = x.dtype
    n = x.size
    if n == 0:
        return x

    default_block_bytes, use_core_parallel = _generation_defaults()
    if target_block_bytes is None:
        target_block_bytes = default_block_bytes

    itemsize = jnp.dtype(dtype).itemsize
    # dtype-aware sublane packing: f32 -> 8, bf16/f16 -> 16, int8/fp8 -> 32.
    sublane = {4: 8, 2: 16, 1: 32}.get(itemsize, 8)

    # Widest lane dim (multiple of 128) dividing n exactly -> metadata-only
    # reshape, no pad / slice / extra HBM pass.
    lane = None
    for cand in (4096, 2048, 1024, 512, 256, 128):
        if n % cand == 0:
            lane = cand
            break

    if lane is None:
        # Ragged size: run the kernel on the 128-aligned bulk and compute the
        # (<128-element) tail with plain jnp -- no whole-tensor pad + slice.
        x_flat = x.reshape(-1)
        n_bulk = (n // 128) * 128
        y_tail = _mish_jnp(x_flat[n_bulk:])
        if n_bulk == 0:
            return y_tail.reshape(orig_shape)
        y_bulk = mish(x_flat[:n_bulk], target_block_bytes=target_block_bytes)
        return jnp.concatenate([y_bulk, y_tail]).reshape(orig_shape)

    x2d = x.reshape(-1, lane)            # metadata-only reshape, no HBM pass
    rows = x2d.shape[0]

    # Block sizing: budget by the f32 compute footprint and clamp so the
    # double-buffered in+out buffers plus the concurrently-live f32
    # temporaries stay under the explicit VMEM limit on every generation.
    per_elem_vmem = 2 * itemsize + 2 * itemsize + _LIVE_F32_TEMPS * 4
    max_elems_by_vmem = max(
        sublane * lane,
        (_VMEM_LIMIT_BYTES - _VMEM_HEADROOM_BYTES) // per_elem_vmem)
    block_elems = min(max(1, target_block_bytes // 4), max_elems_by_vmem)

    rows_per_block = max(sublane, block_elems // lane)
    rows_per_block = (rows_per_block // sublane) * sublane

    if rows_per_block >= rows:
        if rows >= 2 * sublane:
            # Keep at least 2 grid steps so a 2-TensorCore chip (v7x) can
            # split the work across cores.
            half = (rows + 1) // 2
            rows_per_block = ((half + sublane - 1) // sublane) * sublane
        else:
            rows_per_block = rows        # full-extent block (always legal)

    grid = (pl.cdiv(rows, rows_per_block),)

    newton_steps = 1 if itemsize >= 4 else 0
    kernel = functools.partial(_mish_kernel, newton_steps=newton_steps)

    cost = pl.CostEstimate(
        flops=10 * n,
        transcendentals=2 * n,           # exp + reciprocal per element
        bytes_accessed=2 * n * itemsize,
    )

    dim_sem = (pltpu.CORE_PARALLEL,) if use_core_parallel else ("parallel",)

    out2d = pl.pallas_call(
        kernel,
        out_shape=jax.ShapeDtypeStruct((rows, lane), dtype),
        grid_spec=pltpu.PrefetchScalarGridSpec(
            num_scalar_prefetch=0,
            grid=grid,
            in_specs=[pl.BlockSpec((rows_per_block, lane), lambda i: (i, 0))],
            out_specs=pl.BlockSpec((rows_per_block, lane), lambda i: (i, 0)),
        ),
        compiler_params=pltpu.CompilerParams(
            dimension_semantics=dim_sem,
            vmem_limit_bytes=_VMEM_LIMIT_BYTES,
        ),
        cost_estimate=cost,
    )(x2d)

    return out2d.reshape(orig_shape)


if __name__ == "__main__":
    key = jax.random.PRNGKey(0)
    k0, k1, k2 = jax.random.split(key, 3)

    # 1) NCHW input like the PyTorch module receives (small, f32).
    x = jax.random.normal(k0, (2, 4, 16, 16), dtype=jnp.float32) * 3.0
    y = jax.block_until_ready(mish(x))
    y_ref = _mish_jnp(x)
    assert y.shape == x.shape and y.dtype == x.dtype
    assert jnp.allclose(y, y_ref, atol=1e-5, rtol=1e-4)

    # 2) Ragged size (not a multiple of 128) -> exercises the bulk + tail path.
    xr = jax.random.normal(k1, (3, 5, 7, 11), dtype=jnp.float32) * 3.0
    yr = jax.block_until_ready(mish(xr))
    assert yr.shape == xr.shape
    assert jnp.allclose(yr, _mish_jnp(xr), atol=1e-5, rtol=1e-4)

    # 3) Multi-step grid with a partial trailing block (small blocks forced).
    xm = jax.random.normal(k2, (4, 8, 72, 130), dtype=jnp.float32) * 3.0
    ym = jax.block_until_ready(mish(xm, target_block_bytes=64 * 1024))
    assert jnp.allclose(ym, _mish_jnp(xm), atol=1e-5, rtol=1e-4)

    # 4) bf16 input -> exercises dtype-aware sublane tiling + 0 Newton steps.
    xb = (jax.random.normal(k0, (2, 4, 16, 16), dtype=jnp.float32) * 3.0
          ).astype(jnp.bfloat16)
    yb = jax.block_until_ready(mish(xb))
    assert yb.dtype == jnp.bfloat16
    assert jnp.allclose(yb.astype(jnp.float32),
                        _mish_jnp(xb).astype(jnp.float32),
                        atol=2e-2, rtol=2e-2)

    print("KERNEL_OK")
</pallas_src>

<mosaic_0001>
module attributes {stable_mosaic.version = 11 : i64} {
  func.func @_mish_kernel(%arg0: i32, %arg1: memref<1x2048xf32, #tpu.memory_space<vmem>>, %arg2: memref<1x2048xf32, #tpu.memory_space<vmem>>) attributes {dimension_semantics = [#tpu.dimension_semantics<parallel>], iteration_bounds = array<i64: 1>, scalar_prefetch = 0 : i64, scratch_operands = 0 : i64, tpu.core_type = #tpu.core_type<tc>, window_params = [{transform_indices = @transform_0, window_bounds = array<i64: 1, 2048>}, {transform_indices = @transform_1, window_bounds = array<i64: 1, 2048>}]} {
    %c0 = arith.constant 0 : index
    %c0_0 = arith.constant 0 : index
    %0 = vector.load %arg1[%c0, %c0_0] : memref<1x2048xf32, #tpu.memory_space<vmem>>, vector<1x2048xf32>
    %cst = arith.constant 2.000000e+01 : f32
    %1 = vector.broadcast %cst : f32 to vector<1x2048xf32>
    %2 = arith.cmpf ogt, %0, %1 : vector<1x2048xf32>
    %cst_1 = arith.constant 2.000000e+01 : f32
    %3 = vector.broadcast %cst_1 : f32 to vector<1x2048xf32>
    %4 = arith.select %2, %3, %0 : vector<1x2048xi1>, vector<1x2048xf32>
    %5 = math.exp %4 : vector<1x2048xf32>
    %cst_2 = arith.constant 2.000000e+00 : f32
    %6 = vector.broadcast %cst_2 : f32 to vector<1x2048xf32>
    %7 = arith.addf %5, %6 : vector<1x2048xf32>
    %8 = arith.mulf %5, %7 : vector<1x2048xf32>
    %cst_3 = arith.constant 2.000000e+00 : f32
    %9 = vector.broadcast %cst_3 : f32 to vector<1x2048xf32>
    %10 = arith.addf %8, %9 : vector<1x2048xf32>
    %11 = tpu.reciprocal %10 {approx = true} : vector<1x2048xf32> -> vector<1x2048xf32>
    %12 = arith.mulf %10, %11 : vector<1x2048xf32>
    %cst_4 = arith.constant 2.000000e+00 : f32
    %13 = vector.broadcast %cst_4 : f32 to vector<1x2048xf32>
    %14 = arith.subf %13, %12 : vector<1x2048xf32>
    %15 = arith.mulf %11, %14 : vector<1x2048xf32>
    %16 = arith.mulf %8, %15 : vector<1x2048xf32>
    %17 = arith.mulf %0, %16 : vector<1x2048xf32>
    %18 = arith.select %2, %0, %17 : vector<1x2048xi1>, vector<1x2048xf32>
    %c0_5 = arith.constant 0 : index
    %c0_6 = arith.constant 0 : index
    %19 = vector.load %arg2[%c0_5, %c0_6] : memref<1x2048xf32, #tpu.memory_space<vmem>>, vector<1x2048xf32>
    tpu.vector_store %arg2[%c0_5, %c0_6], %18 {strides = array<i32>} : memref<1x2048xf32, #tpu.memory_space<vmem>>, vector<1x2048xf32>,
    return
  }
  func.func @transform_0(%arg0: i32) -> (i32, i32) {
    %c0_i32 = arith.constant 0 : i32
    %c0_i32_0 = arith.constant 0 : i32
    return %arg0, %c0_i32 : i32, i32
  }
  func.func @transform_1(%arg0: i32) -> (i32, i32) {
    %c0_i32 = arith.constant 0 : i32
    %c0_i32_0 = arith.constant 0 : i32
    return %arg0, %c0_i32 : i32, i32
  }
}

</mosaic_0001>

<bundles_post_ra>
// kernel: tpu_custom_call.1
= control target key start
LH: loop header
LB: loop body
LE: loop exit
PB: predicated region body
PF: predicated region fallthrough
CT: control target
= control target key end

     0   :  { %6 = vsyncpa [#allocation3], 0  ;;  %s144_s0 = inlined_call_operand.hbm [shape: f32[1,2048], index: 0, kind: input, shape index: {}]   ;;  %s145_s1 = inlined_call_operand.hbm [shape: f32[1,2048], index: 1, kind: output, shape index: {}]  }
   0x1   :  { %7 = vsyncpa [#allocation4], 0  ;;  %s122_s6 = smov [#allocation2]  }
   0x2   :  { %s14_s7 = sshll.u32 %s122_s6, 4  ;;  %s15_s7 = int_to_ptr.vmem [resolvable:$true] %s14_s7 }
   0x3   :  { %s86_s8 = scalar_lea.vmem %s15_s7, 256  ;;  %p91_p1 = scmp.lt.s32.totalorder %s15_s7, %s15_s7 }
   0x4   :  { %p87_p0 = scmp.ne.s32.totalorder %s15_s7, %s86_s8  ;;  %p92_p2 = scmp.lt.s32.totalorder %s86_s8, %s86_s8 }
   0x6   :  { %p93_p3 = por %p92_p2, %p91_p1 }
   0x8   :  { %p94_p4 = pnand %p93_p3, %p87_p0 }
   0xa   :  { %97 = shalt.err (!%p94_p4)
}
   0xb   :  { %17 = dma.hbm_to_vmem [thread:$0]  %s144_s0, 256, %s15_s7, [#allocation3]  }
   0xc   :  { %118 = dma.done.wait [#allocation3], 256  }
   0xd   :  { %119 = vsyncadd [#allocation3], 4294967040  ;;  %v21_v0 = vld [vmem:[#allocation2] sm:$0xff]  ;;  %v22_v1 = vld [vmem:[#allocation2 + $0x8] sm:$0xff]  ;;  %s123_s0 = smov [#allocation5]  }
   0xe   :  { %vm23_vm0 = vcmp.gt.f32.partialorder %v21_v0, 20.0  ;;  %vm24_vm1 = vcmp.gt.f32.partialorder %v22_v1, 20.0  ;;  %s59_s11 = sshll.u32 %s123_s0, 4  ;;  %s60_s11 = int_to_ptr.vmem [resolvable:$true] %s59_s11 }
   0xf   :  { %v25_v2 = vsel %vm23_vm0, 20.0, %v21_v0  ;;  %v26_v3 = vsel %vm24_vm1, 20.0, %v22_v1  ;;  %s98_s12 = scalar_lea.vmem %s60_s11, 256  ;;  %p103_p6 = scmp.lt.s32.totalorder %s60_s11, %s60_s11 }
  0x10   :  { %v27_v4 = vmul.f32 1.442695, %v25_v2  ;;  %v29_v5 = vmul.f32 1.442695, %v26_v3  ;;  %p99_p5 = scmp.ne.s32.totalorder %s60_s11, %s98_s12  ;;  %p104_p7 = scmp.lt.s32.totalorder %s98_s12, %s98_s12 }
  0x12   :  { %70 = vpow2.f32 %v27_v4  ;;  %p105_p8 = por %p104_p7, %p103_p6 }
  0x13   :  { %72 = vpow2.f32 %v29_v5 }
  0x14   :  { %p106_p9 = pnand %p105_p8, %p99_p5 }
  0x1f   :  { %v71_v6 = vpop.eup %70 }
  0x20   :  { %v73_v7 = vpop.eup %72  ;;  %v31_v8 = vadd.f32 2.0, %v71_v6 }
  0x21   :  { %v32_v9 = vadd.f32 2.0, %v73_v7 }
  0x22   :  { %v33_v10 = vmul.f32 %v71_v6, %v31_v8 }
  0x23   :  { %v34_v11 = vmul.f32 %v73_v7, %v32_v9 }
  0x24   :  { %v35_v12 = vadd.f32 2.0, %v33_v10 }
  0x25   :  { %v36_v13 = vadd.f32 2.0, %v34_v11 }
  0x26   :  { %74 = vrcp.f32 %v35_v12 }
  0x27   :  { %76 = vrcp.f32 %v36_v13 }
  0x33   :  { %v75_v14 = vpop.eup %74 }
  0x34   :  { %v77_v15 = vpop.eup %76  ;;  %v39_v16 = vmul.f32 %v75_v14, %v35_v12 }
  0x35   :  { %v40_v17 = vmul.f32 %v77_v15, %v36_v13 }
  0x36   :  { %v41_v18 = vsub.f32 2.0, %v39_v16 }
  0x37   :  { %v42_v19 = vsub.f32 2.0, %v40_v17 }
  0x38   :  { %v43_v20 = vmul.f32 %v75_v14, %v41_v18 }
  0x39   :  { %v44_v21 = vmul.f32 %v77_v15, %v42_v19 }
  0x3a   :  { %v45_v22 = vmul.f32 %v43_v20, %v33_v10 }
  0x3b   :  { %v46_v23 = vmul.f32 %v44_v21, %v34_v11 }
  0x3c   :  { %v47_v24 = vmul.f32 %v45_v22, %v21_v0 }
  0x3d   :  { %v48_v25 = vmul.f32 %v46_v23, %v22_v1 }
  0x3e   :  { %v49_v26 = vsel %vm23_vm0, %v21_v0, %v47_v24 }
  0x3f   :  { %51 = vst [vmem:[#allocation5] sm:$0xff] %v49_v26  ;;  %v50_v27 = vsel %vm24_vm1, %v22_v1, %v48_v25 }
  0x40   :  { %52 = vst [vmem:[#allocation5 + $0x8] sm:$0xff] %v50_v27 }
  0x41   :  { %109 = shalt.err (!%p106_p9)
}
  0x42   :  { %62 = dma.vmem_to_hbm [thread:$0]  %s60_s11, 256, %s145_s1, [#allocation4]  }
  0x43   :  { %120 = dma.done.wait [#allocation4], 256  }
  0x44   :  { %121 = vsyncadd [#allocation4], 4294967040 }
  0x45   :  { %66 = vsyncpa [#allocation3], 1 }
  0x46   :  { %67 = vsyncpa [#allocation4], 1 }

</bundles_post_ra>
